<compile_context>
chip_gen: v7x
topology: tpu7x:2x2x1
jax: 0.10.0
libtpu: 0.0.40
codegen_flags: <defaults>
</compile_context>

<pallas_src>
import jax
import jax.numpy as jnp
from jax import lax
from jax.experimental import pallas as pl
from jax.experimental.pallas import tpu as pltpu


def _round_up(n, m):
    return ((n + m - 1) // m) * m


def mlp_kernel(x_ref, w1_ref, b1_ref, w2_ref, b2_ref, w3_ref, b3_ref, o_ref):
    # x_ref: (TB, 8) activations straight from HBM (row-major, no wrapper
    # transpose).  Weights are PyTorch (out, in) layout; biases are (out, 1).
    # Layer 1 as an rhs-transposed matmul: (16, 8) x (TB, 8)^T -> (16, TB).
    h1 = lax.dot_general(
        w1_ref[...], x_ref[...],
        dimension_numbers=(((1,), (1,)), ((), ())),
        preferred_element_type=jnp.float32)
    h1 = jnp.maximum(h1 + b1_ref[...], 0.0)                              # (16, TB)
    # Layer 2: canonical MXU matmul in transposed (feature-major) form.
    h2 = jnp.dot(w2_ref[...], h1, preferred_element_type=jnp.float32)    # (32, TB)
    h2 = jnp.maximum(h2 + b2_ref[...], 0.0)
    # Layer 3: single output feature -> VPU multiply + sublane reduce
    # (avoids an MXU pass with only one useful output column).
    y = jnp.sum(h2 * w3_ref[...], axis=0, keepdims=True) + b3_ref[...]   # (1, TB)
    o_ref[...] = y.astype(o_ref.dtype)                                   # lane-dense store


def _choose_tile(batch, block_b):
    """Lane-dense batch tile (multiple of 128).  Large tiles amortize the
    fixed per-grid-step overhead; keep >= 2 grid steps when the batch allows
    so ("parallel",) can shard tiles across v7x's two TensorCores."""
    cap = max(128, _round_up(block_b, 128))
    b128 = _round_up(batch, 128)
    if b128 <= 128:
        return 128
    half = _round_up(pl.cdiv(b128, 2), 128)
    return min(cap, half)


def mlp_forward(x, params, *, block_b=8192, vmem_limit_bytes=32 * 1024 * 1024):
    """x: (B, 8) float32.
    params: ((w1 (16,8), b1 (16,)), (w2 (32,16), b2 (32,)), (w3 (1,32), b3 (1,)))
    in PyTorch nn.Linear layout (weight = (out_features, in_features))."""
    (w1, b1), (w2, b2), (w3, b3) = params
    B, F = x.shape

    TB = _choose_tile(B, block_b)
    grid_b = pl.cdiv(B, TB)
    B_pad = grid_b * TB

    # One-time tiny reshapes of the parameters to the column layout the kernel
    # expects (biases as (out, 1); w3 as a (32, 1) column).
    b1c = b1.reshape(-1, 1)
    b2c = b2.reshape(-1, 1)
    w3c = w3.reshape(-1, 1)
    b3c = b3.reshape(1, 1)

    def resident(a):
        # Constant index_map: fetched once, VMEM-resident for the whole grid.
        return pl.BlockSpec(a.shape, lambda i: (0, 0))

    flops = 2 * B_pad * (8 * 16 + 16 * 32 + 32 * 1)
    bytes_accessed = 4 * (B * F + B_pad + w1.size + w2.size + w3.size
                          + b1.size + b2.size + b3.size)

    out = pl.pallas_call(
        mlp_kernel,
        out_shape=jax.ShapeDtypeStruct((1, B_pad), x.dtype),
        grid=(grid_b,),
        in_specs=[
            # Activations tiled over batch, read directly from HBM.  The last
            # block may extend past B: out-of-range rows hold unspecified
            # values, but each batch row maps only to its own output column,
            # so garbage stays in padded columns that the wrapper slices off.
            pl.BlockSpec((TB, F), lambda i: (i, 0)),
            resident(w1), resident(b1c),
            resident(w2), resident(b2c),
            resident(w3c), resident(b3c),
        ],
        out_specs=pl.BlockSpec((1, TB), lambda i: (0, i)),
        compiler_params=pltpu.CompilerParams(
            dimension_semantics=("parallel",),       # megacore sharding on v7x
            vmem_limit_bytes=vmem_limit_bytes,       # raise v5e's 16 MiB default
        ),
        cost_estimate=pl.CostEstimate(
            flops=flops, transcendentals=0, bytes_accessed=bytes_accessed),
    )(x, w1, b1c, w2, b2c, w3c, b3c)

    return out[0, :B].reshape(B, 1)


def init_params(key):
    # Deterministic init mimicking nn.Linear default (+/- 1/sqrt(fan_in)),
    # stored in PyTorch layout: weight (out, in), bias (out,).
    ks = jax.random.split(key, 6)

    def lin(kw, kb, fan_in, fan_out):
        bound = 1.0 / jnp.sqrt(fan_in)
        w = jax.random.uniform(kw, (fan_out, fan_in), jnp.float32, -bound, bound)
        b = jax.random.uniform(kb, (fan_out,), jnp.float32, -bound, bound)
        return w, b

    return (lin(ks[0], ks[1], 8, 16),
            lin(ks[2], ks[3], 16, 32),
            lin(ks[4], ks[5], 32, 1))


def reference_forward(x, params):
    (w1, b1), (w2, b2), (w3, b3) = params
    h = jnp.maximum(x @ w1.T + b1, 0.0)
    h = jnp.maximum(h @ w2.T + b2, 0.0)
    return h @ w3.T + b3


if __name__ == "__main__":
    key = jax.random.PRNGKey(0)
    k_x, k_x2, k_p = jax.random.split(key, 3)
    params = init_params(k_p)

    # Small shape consistent with the module: batch=8, in_features=8.
    x = jax.random.normal(k_x, (8, 8), jnp.float32)
    out = jax.block_until_ready(mlp_forward(x, params))
    ref = reference_forward(x, params)
    assert out.shape == (8, 1)
    assert jnp.allclose(out, ref, atol=1e-5, rtol=1e-5)

    # Multi-tile path: B > TB and B not a multiple of TB (partial last tile).
    x2 = jax.random.normal(k_x2, (300, 8), jnp.float32)
    out2 = jax.block_until_ready(mlp_forward(x2, params, block_b=128))
    ref2 = reference_forward(x2, params)
    assert out2.shape == (300, 1)
    assert jnp.allclose(out2, ref2, atol=1e-5, rtol=1e-5)

    print("KERNEL_OK")
</pallas_src>

<mosaic_0001>
module attributes {stable_mosaic.version = 11 : i64} {
  func.func @mlp_kernel(%arg0: i32, %arg1: memref<128x8xf32, #tpu.memory_space<vmem>>, %arg2: memref<16x8xf32, #tpu.memory_space<vmem>>, %arg3: memref<16x1xf32, #tpu.memory_space<vmem>>, %arg4: memref<32x16xf32, #tpu.memory_space<vmem>>, %arg5: memref<32x1xf32, #tpu.memory_space<vmem>>, %arg6: memref<32x1xf32, #tpu.memory_space<vmem>>, %arg7: memref<1x1xf32, #tpu.memory_space<vmem>>, %arg8: memref<1x128xf32, #tpu.memory_space<vmem>>) attributes {dimension_semantics = [#tpu.dimension_semantics<parallel>], iteration_bounds = array<i64: 1>, scalar_prefetch = 0 : i64, scratch_operands = 0 : i64, tpu.core_type = #tpu.core_type<tc>, window_params = [{transform_indices = @transform_0, window_bounds = array<i64: 128, 8>}, {pipeline_mode = #tpu.pipeline_mode<synchronous>, transform_indices = @transform_1, window_bounds = array<i64: 16, 8>}, {pipeline_mode = #tpu.pipeline_mode<synchronous>, transform_indices = @transform_2, window_bounds = array<i64: 16, 1>}, {pipeline_mode = #tpu.pipeline_mode<synchronous>, transform_indices = @transform_3, window_bounds = array<i64: 32, 16>}, {pipeline_mode = #tpu.pipeline_mode<synchronous>, transform_indices = @transform_4, window_bounds = array<i64: 32, 1>}, {pipeline_mode = #tpu.pipeline_mode<synchronous>, transform_indices = @transform_5, window_bounds = array<i64: 32, 1>}, {pipeline_mode = #tpu.pipeline_mode<synchronous>, transform_indices = @transform_6, window_bounds = array<i64: 1, 1>}, {transform_indices = @transform_7, window_bounds = array<i64: 1, 128>}]} {
    %c0 = arith.constant 0 : index
    %c0_0 = arith.constant 0 : index
    %0 = vector.load %arg2[%c0, %c0_0] : memref<16x8xf32, #tpu.memory_space<vmem>>, vector<16x8xf32>
    %c0_1 = arith.constant 0 : index
    %c0_2 = arith.constant 0 : index
    %1 = vector.load %arg1[%c0_1, %c0_2] : memref<128x8xf32, #tpu.memory_space<vmem>>, vector<128x8xf32>
    %cst = arith.constant dense<0.000000e+00> : vector<16x128xf32>
    %2 = tpu.matmul %0, %1, %cst {dimension_numbers = #tpu.dot_dimension_numbers<[1], [1], [0], [0], [0, 0, 1, 0], [], []>} : vector<16x8xf32>, vector<128x8xf32>, vector<16x128xf32> -> vector<16x128xf32>
    %c0_3 = arith.constant 0 : index
    %c0_4 = arith.constant 0 : index
    %3 = vector.load %arg3[%c0_3, %c0_4] : memref<16x1xf32, #tpu.memory_space<vmem>>, vector<16x1xf32>
    %4 = vector.broadcast %3 : vector<16x1xf32> to vector<16x128xf32>
    %5 = arith.addf %2, %4 : vector<16x128xf32>
    %cst_5 = arith.constant 0.000000e+00 : f32
    %6 = vector.broadcast %cst_5 : f32 to vector<16x128xf32>
    %7 = arith.maximumf %5, %6 : vector<16x128xf32>
    %c0_6 = arith.constant 0 : index
    %c0_7 = arith.constant 0 : index
    %8 = vector.load %arg4[%c0_6, %c0_7] : memref<32x16xf32, #tpu.memory_space<vmem>>, vector<32x16xf32>
    %cst_8 = arith.constant dense<0.000000e+00> : vector<32x128xf32>
    %9 = tpu.matmul %8, %7, %cst_8 {dimension_numbers = #tpu.dot_dimension_numbers<[1], [0], [0], [1], [0, 0, 1, 1], [], []>} : vector<32x16xf32>, vector<16x128xf32>, vector<32x128xf32> -> vector<32x128xf32>
    %c0_9 = arith.constant 0 : index
    %c0_10 = arith.constant 0 : index
    %10 = vector.load %arg5[%c0_9, %c0_10] : memref<32x1xf32, #tpu.memory_space<vmem>>, vector<32x1xf32>
    %11 = vector.broadcast %10 : vector<32x1xf32> to vector<32x128xf32>
    %12 = arith.addf %9, %11 : vector<32x128xf32>
    %cst_11 = arith.constant 0.000000e+00 : f32
    %13 = vector.broadcast %cst_11 : f32 to vector<32x128xf32>
    %14 = arith.maximumf %12, %13 : vector<32x128xf32>
    %c0_12 = arith.constant 0 : index
    %c0_13 = arith.constant 0 : index
    %15 = vector.load %arg6[%c0_12, %c0_13] : memref<32x1xf32, #tpu.memory_space<vmem>>, vector<32x1xf32>
    %16 = vector.broadcast %15 : vector<32x1xf32> to vector<32x128xf32>
    %17 = arith.mulf %14, %16 : vector<32x128xf32>
    %cst_14 = arith.constant dense<0.000000e+00> : vector<128xf32>
    %18 = vector.multi_reduction <add>, %17, %cst_14 [0] : vector<32x128xf32> to vector<128xf32>
    %19 = vector.shape_cast %18 : vector<128xf32> to vector<1x128xf32>
    %c0_15 = arith.constant 0 : index
    %c0_16 = arith.constant 0 : index
    %20 = vector.load %arg7[%c0_15, %c0_16] : memref<1x1xf32, #tpu.memory_space<vmem>>, vector<1x1xf32>
    %21 = vector.broadcast %20 : vector<1x1xf32> to vector<1x128xf32>
    %22 = arith.addf %19, %21 : vector<1x128xf32>
    %c0_17 = arith.constant 0 : index
    %c0_18 = arith.constant 0 : index
    %23 = vector.load %arg8[%c0_17, %c0_18] : memref<1x128xf32, #tpu.memory_space<vmem>>, vector<1x128xf32>
    tpu.vector_store %arg8[%c0_17, %c0_18], %22 {strides = array<i32>} : memref<1x128xf32, #tpu.memory_space<vmem>>, vector<1x128xf32>,
    return
  }
  func.func @transform_0(%arg0: i32) -> (i32, i32) {
    %c0_i32 = arith.constant 0 : i32
    %c0_i32_0 = arith.constant 0 : i32
    return %arg0, %c0_i32 : i32, i32
  }
  func.func @transform_1(%arg0: i32) -> (i32, i32) {
    %c0_i32 = arith.constant 0 : i32
    %c0_i32_0 = arith.constant 0 : i32
    %c0_i32_1 = arith.constant 0 : i32
    return %c0_i32, %c0_i32_0 : i32, i32
  }
  func.func @transform_2(%arg0: i32) -> (i32, i32) {
    %c0_i32 = arith.constant 0 : i32
    %c0_i32_0 = arith.constant 0 : i32
    %c0_i32_1 = arith.constant 0 : i32
    return %c0_i32, %c0_i32_0 : i32, i32
  }
  func.func @transform_3(%arg0: i32) -> (i32, i32) {
    %c0_i32 = arith.constant 0 : i32
    %c0_i32_0 = arith.constant 0 : i32
    %c0_i32_1 = arith.constant 0 : i32
    return %c0_i32, %c0_i32_0 : i32, i32
  }
  func.func @transform_4(%arg0: i32) -> (i32, i32) {
    %c0_i32 = arith.constant 0 : i32
    %c0_i32_0 = arith.constant 0 : i32
    %c0_i32_1 = arith.constant 0 : i32
    return %c0_i32, %c0_i32_0 : i32, i32
  }
  func.func @transform_5(%arg0: i32) -> (i32, i32) {
    %c0_i32 = arith.constant 0 : i32
    %c0_i32_0 = arith.constant 0 : i32
    %c0_i32_1 = arith.constant 0 : i32
    return %c0_i32, %c0_i32_0 : i32, i32
  }
  func.func @transform_6(%arg0: i32) -> (i32, i32) {
    %c0_i32 = arith.constant 0 : i32
    %c0_i32_0 = arith.constant 0 : i32
    %c0_i32_1 = arith.constant 0 : i32
    return %c0_i32, %c0_i32_0 : i32, i32
  }
  func.func @transform_7(%arg0: i32) -> (i32, i32) {
    %c0_i32 = arith.constant 0 : i32
    %c0_i32_0 = arith.constant 0 : i32
    return %c0_i32, %arg0 : i32, i32
  }
}

</mosaic_0001>

<bundles_post_ra>
// kernel: tpu_custom_call.1
= control target key start
LH: loop header
LB: loop body
LE: loop exit
PB: predicated region body
PF: predicated region fallthrough
CT: control target
= control target key end

     0   :  { %s752_s0 = inlined_call_operand.vmem [shape: f32[8,8], index: 0, kind: input, shape index: {}]   ;;  %s753_s1 = inlined_call_operand.vmem [shape: f32[16,8], index: 1, kind: input, shape index: {}]   ;;  %s754_s2 = inlined_call_operand.vmem [shape: f32[16,1], index: 2, kind: input, shape index: {}]   ;;  %s755_s3 = inlined_call_operand.vmem [shape: f32[32,16], index: 3, kind: input, shape index: {}]   ;;  %s756_s4 = inlined_call_operand.vmem [shape: f32[32,1], index: 4, kind: input, shape index: {}]   ;;  %s757_s5 = inlined_call_operand.vmem [shape: f32[32,1], index: 5, kind: input, shape index: {}]   ;;  %s758_s6 = inlined_call_operand.<no memory space> [shape: f32[1,1], index: 6, kind: input, shape index: {}]   ;;  %s759_s7 = inlined_call_operand.hbm [shape: f32[1,128], index: 7, kind: output, shape index: {}]  }
   0x1   :  { %v12_v0 = vstv %s758_s6 }
   0x2   :  { %13 = vst [vmem:[#allocation2] sm:$0x1] %v12_v0 }
   0x3   :  { %v31_v1 = vld [vmem:[%s752_s0] sm:$0xff]  ;;  %v32_v2 = vld [vmem:[%s752_s0 + $0x8] sm:$0xff]  ;;  %vm59_vm0 = vcmask 64512   ;;  %v33_v3 = vld [vmem:[%s752_s0 + $0x10] sm:$0xff]  ;;  %v555_v7 = vmov 0  }
   0x4   :  { %v475_v4 = vpack.c.bf16 %v32_v2, %v31_v1  ;;  %vm611_vm1 = vmpackc.low %vm59_vm0, %vm59_vm0  ;;  %v34_v6 = vld [vmem:[%s752_s0 + $0x18] sm:$0xff]  ;;  %529 = vset.pattern.permute.xlu0 %v555_v7  ;;  %530 = vset.pattern.permute.xlu1 %v555_v7  ;;  %v29_v9 = vld [vmem:[%s753_s1] sm:$0xff] }
   0x5   :  { %v481_v8 = vpack.c.bf16 %v34_v6, %v33_v3  ;;  %v35_v10 = vld [vmem:[%s752_s0 + $0x20] sm:$0xff]  ;;  %v36_v11 = vld [vmem:[%s752_s0 + $0x28] sm:$0xff]  ;;  %462 = vmatprep.mubr.msk.f32.mxu0 %vm59_vm0, %v29_v9 }
   0x6   :  { %477 = vmatprep.subr.msk.bf16.mxu0 %vm611_vm1, %v475_v4  ;;  %v47_v12 = vld [vmem:[%s754_s2] sm:$0xff]  ;;  %v48_v13 = vld [vmem:[%s754_s2 + $0x8] sm:$0xff] }
   0x7   :  { %480 = vmatpush3.bf16.xpose.msk.msra.mxu0 %vm611_vm1, %v475_v4  ;;  %51 = vperm.xlu0 %529, %v47_v12  }
   0x8   :  { %483 = vmatprep.subr.msk.bf16.mxu0 %vm611_vm1, %v481_v8 }
   0x9   :  { %14 = vsyncpa [#allocation4], 0  ;;  %v487_v14 = vpack.c.bf16 %v36_v11, %v35_v10  ;;  %v197_v15 = vld [vmem:[%s756_s4 + $0x10] sm:$0xff]  ;;  %v38_v17 = vld [vmem:[%s752_s0 + $0x38] sm:$0xff]  ;;  %vm219_vm2 = vcmask 130048  }
   0xa   :  { %v37_v16 = vld [vmem:[%s752_s0 + $0x30] sm:$0xff]  ;;  %v321_v18 = vld [vmem:[%s757_s5] sm:$0xff]  ;;  %v40_v22 = vld [vmem:[%s752_s0 + $0x48] sm:$0xff] }
   0xb   :  { %56 = vperm.xlu0 %529, %v48_v13   ;;  %v493_v19 = vpack.c.bf16 %v38_v17, %v37_v16  ;;  %v323_v20 = vld [vmem:[%s757_s5 + $0x10] sm:$0xff]  ;;  %v39_v21 = vld [vmem:[%s752_s0 + $0x40] sm:$0xff]  ;;  %v42_v26 = vld [vmem:[%s752_s0 + $0x58] sm:$0xff] }
   0xc   :  { %v358_v23 = vld [vmem:[#allocation2] sm:$0x1]  ;;  %v499_v24 = vpack.c.bf16 %v40_v22, %v39_v21  ;;  %v41_v25 = vld [vmem:[%s752_s0 + $0x50] sm:$0xff]  ;;  %v44_v29 = vld [vmem:[%s752_s0 + $0x68] sm:$0xff] }
   0xd   :  { %v505_v27 = vpack.c.bf16 %v42_v26, %v41_v25  ;;  %v43_v28 = vld [vmem:[%s752_s0 + $0x60] sm:$0xff]  ;;  %v45_v31 = vld [vmem:[%s752_s0 + $0x70] sm:$0xff]  ;;  %v46_v32 = vld [vmem:[%s752_s0 + $0x78] sm:$0xff] }
   0xe   :  { %v511_v30 = vpack.c.bf16 %v44_v29, %v43_v28  ;;  %v517_v33 = vpack.c.bf16 %v46_v32, %v45_v31  ;;  %v30_v34 = vld [vmem:[%s753_s1 + $0x8] sm:$0xff]  ;;  %v191_v35 = vld [vmem:[%s755_s3] sm:$0xff]  ;;  %v198_v38 = vld [vmem:[%s756_s4 + $0x18] sm:$0xff] }
   0xf   :  { %486 = vmatpush3.bf16.xpose.msk.msra.mxu0 %vm611_vm1, %v481_v8  ;;  %211 = vperm.xlu0 %529, %v197_v15   ;;  %v195_v36 = vld [vmem:[%s756_s4] sm:$0xff]  ;;  %v196_v37 = vld [vmem:[%s756_s4 + $0x8] sm:$0xff]  ;;  %v324_v40 = vld [vmem:[%s757_s5 + $0x18] sm:$0xff]  ;;  %v364_v15 = vlaneseq }
  0x10   :  { %489 = vmatprep.subr.msk.bf16.mxu0 %vm611_vm1, %v487_v14  ;;  %469 = vmatprep.mubr.msk.f32.mxu1 %vm219_vm2, %v191_v35  ;;  %v322_v39 = vld [vmem:[%s757_s5 + $0x8] sm:$0xff]  ;;  %v193_v51 = vld [vmem:[%s755_s3 + $0x10] sm:$0xff]  ;;  %v194_v52 = vld [vmem:[%s755_s3 + $0x18] sm:$0xff] }
  0x11   :  { %201 = vperm.xlu1 %530, %v195_v36   ;;  %v192_v50 = vld [vmem:[%s755_s3 + $0x8] sm:$0xff]  ;;  %s556_s3 = smov [#allocation3]  }
  0x12   :  { %s376_s12 = sshll.u32 %s556_s3, 4  ;;  %s377_s12 = int_to_ptr.vmem [resolvable:$true] %s376_s12 }
  0x13   :  { %327 = vperm.xlu0 %529, %v321_v18   ;;  %v365_v18 = vshrl.u32 %v364_v15, 7  ;;  %s531_s13 = scalar_lea.vmem %s377_s12, 16  ;;  %s535_s14 = scalar_lea.vmem %s377_s12, 32 }
  0x14   :  { %p532_p0 = scmp.ne.s32.totalorder %s377_s12, %s531_s13  ;;  %p536_p1 = scmp.lt.s32.totalorder %s377_s12, %s377_s12 }
  0x15   :  { %206 = vperm.xlu1 %530, %v196_v37   ;;  %v366_v21 = vsub.s32 0, %v365_v18  ;;  %p537_p2 = scmp.lt.s32.totalorder %s535_s14, %s531_s13 }
  0x17   :  { %492 = vmatpush3.bf16.xpose.msk.msra.mxu0 %vm611_vm1, %v487_v14  ;;  %337 = vperm.xlu0 %529, %v323_v20   ;;  %p538_p3 = por %p537_p2, %p536_p1 }
  0x18   :  { %495 = vmatprep.subr.msk.bf16.mxu0 %vm611_vm1, %v493_v19 }
  0x19   :  { %216 = vperm.xlu1 %530, %v198_v38   ;;  %p539_p4 = pnand %p538_p3, %p532_p0 }
  0x1b   :  { %361 = vperm.xlu0 %529, %v358_v23  }
  0x1d   :  { %332 = vperm.xlu1 %530, %v322_v39  }
  0x1f   :  { %498 = vmatpush3.bf16.xpose.msk.msra.mxu0 %vm611_vm1, %v493_v19 }
  0x20   :  { %501 = vmatprep.subr.msk.bf16.mxu0 %vm611_vm1, %v499_v24 }
  0x21   :  { %342 = vperm.xlu1 %530, %v324_v40  }
  0x27   :  { %504 = vmatpush3.bf16.xpose.msk.msra.mxu0 %vm611_vm1, %v499_v24 }
  0x28   :  { %507 = vmatprep.subr.msk.bf16.mxu0 %vm611_vm1, %v505_v27 }
  0x2f   :  { %510 = vmatpush3.bf16.xpose.msk.msra.mxu0 %vm611_vm1, %v505_v27 }
  0x30   :  { %513 = vmatprep.subr.msk.bf16.mxu0 %vm611_vm1, %v511_v30 }
  0x37   :  { %516 = vmatpush3.bf16.xpose.msk.msra.mxu0 %vm611_vm1, %v511_v30 }
  0x38   :  { %519 = vmatprep.subr.msk.bf16.mxu0 %vm611_vm1, %v517_v33 }
  0x3f   :  { %522 = vmatpush3.bf16.xpose.msk.msra.mxu0 %vm611_vm1, %v517_v33 }
  0x46   :  { %463 = vmatmul.mubr.msk.f32.vlgmr.msra.gmra.mrb[0].mxu0 %vm59_vm0, %v30_v34 }
  0x86   :  { %v52_v41 = vpop.permute.xlu0 %51 }
  0x8a   :  { %v57_v42 = vpop.permute.xlu0 %56 }
  0x8e   :  { %v212_v55 = vpop.permute.xlu0 %211 }
  0x90   :  { %v202_v53 = vpop.permute.xlu1 %201 }
  0x92   :  { %v328_v61 = vpop.permute.xlu0 %327 }
  0x94   :  { %v207_v54 = vpop.permute.xlu1 %206 }
  0x96   :  { %v338_v10 = vpop.permute.xlu0 %337 }
  0x98   :  { %v217_v56 = vpop.permute.xlu1 %216 }
  0x9a   :  { %v362_v23 = vpop.permute.xlu0 %361 }
  0x9b   :  { %v367_v25 = vrot.slane %v362_v23, %v366_v21 }
  0x9c   :  { %v333_v63 = vpop.permute.xlu1 %332 }
  0xa0   :  { %v343_v12 = vpop.permute.xlu1 %342 }
 0x119   :  { %v464_v43 = vpop.f32.mrb[0].mxu0 }
 0x11a   :  { %v186_v44 = vadd.f32 %v464_v43, %v57_v42  ;;  %v180_v45 = vpop.f32.mrb[1].mxu0 }
 0x11b   :  { %v181_v46 = vadd.f32 %v180_v45, %v52_v41 }
 0x11c   :  { %v190_v47 = vmax.f32 %v186_v44, 0.0 }
 0x11d   :  { %v189_v48 = vmax.f32 %v181_v46, 0.0 }
 0x11f   :  { %v523_v49 = vpack.c.bf16 %v190_v47, %v189_v48 }
 0x121   :  { %524 = vmatprep.subr.bf16.mxu1 %v523_v49 }
 0x122   :  { %526 = vmatpush3.bf16.msra.mxu1 %v523_v49 }
 0x125   :  { %470 = vmatmul.mubr.msk.f32.vlgmr.msra.gmra.mrb[0].mxu1 %vm219_vm2, %v192_v50 }
 0x126   :  { %472 = vmatprep.mubr.msk.f32.mxu1 %vm219_vm2, %v193_v51 }
 0x129   :  { %473 = vmatmul.mubr.msk.f32.gmra.mrb[2].mxu1 %vm219_vm2, %v194_v52 }
 0x1f8   :  { %v471_v57 = vpop.f32.mrb[0].mxu1 }
 0x1f9   :  { %v304_v58 = vadd.f32 %v471_v57, %v207_v54  ;;  %v298_v59 = vpop.f32.mrb[1].mxu1 }
 0x1fa   :  { %v299_v60 = vadd.f32 %v298_v59, %v202_v53 }
 0x1fb   :  { %v318_v62 = vmax.f32 %v304_v58, 0.0 }
 0x1fc   :  { %v317_v0 = vmax.f32 %v299_v60, 0.0  ;;  %v474_v1 = vpop.f32.mrb[2].mxu1 }
 0x1fd   :  { %v346_v2 = vmul.f32 %v333_v63, %v318_v62  ;;  %v314_v3 = vadd.f32 %v474_v1, %v217_v56  ;;  %v308_v4 = vpop.f32.mrb[3].mxu1 }
 0x1fe   :  { %v345_v5 = vmul.f32 %v328_v61, %v317_v0  ;;  %v309_v6 = vadd.f32 %v308_v4, %v212_v55 }
 0x1ff   :  { %v320_v8 = vmax.f32 %v314_v3, 0.0 }
 0x200   :  { %v349_v7 = vadd.f32 %v346_v2, %v345_v5  ;;  %v319_v9 = vmax.f32 %v309_v6, 0.0 }
 0x201   :  { %v348_v13 = vmul.f32 %v343_v12, %v320_v8 }
 0x202   :  { %v347_v11 = vmul.f32 %v338_v10, %v319_v9 }
 0x204   :  { %v350_v14 = vadd.f32 %v349_v7, %v347_v11 }
 0x206   :  { %v351_v16 = vadd.f32 %v350_v14, %v348_v13 }
 0x208   :  { %v352_v17 = vrot.slane %v351_v16, 4 }
 0x20a   :  { %v353_v19 = vadd.f32 %v352_v17, %v351_v16 }
 0x20c   :  { %v354_v20 = vrot.slane %v353_v19, 2 }
 0x20e   :  { %v355_v22 = vadd.f32 %v354_v20, %v353_v19 }
 0x210   :  { %v356_v24 = vrot.slane %v355_v22, 1 }
 0x212   :  { %v357_v26 = vadd.f32 %v356_v24, %v355_v22 }
 0x214   :  { %v368_v27 = vadd.f32 %v367_v25, %v357_v26 }
 0x216   :  { %369 = vst [vmem:[#allocation3] sm:$0x1] %v368_v27 }
 0x217   :  { %542 = shalt.err (!%p539_p4)
}
 0x218   :  { %s543_s17 = scalar_lea.hbm %s759_s7, 16 }
 0x219   :  { %p544_p5 = scmp.ne.s32.totalorder %s759_s7, %s543_s17  ;;  %p547_p6 = scmp.lt.u32.totalorder %s543_s17, %s759_s7 }
 0x21b   :  { %p549_p7 = pnand %p547_p6, %p544_p5 }
 0x21d   :  { %552 = shalt.err (!%p549_p7)
}
 0x21e   :  { %379 = dma.vmem_to_hbm [thread:$0]  %s377_s12, 16, %s759_s7, [#allocation4]  }
 0x21f   :  { %553 = dma.done.wait [#allocation4], 16  }
 0x220   :  { %554 = vsyncadd [#allocation4], 4294967280 }
 0x221   :  { %383 = vsyncpa [#allocation4], 1 }

</bundles_post_ra>
